<compile_context>
chip_gen: v7x
topology: tpu7x:2x2x1
jax: 0.10.0
libtpu: 0.0.40
codegen_flags: <defaults>
</compile_context>

<pallas_src>
import functools

import jax
import jax.numpy as jnp
from jax.experimental import pallas as pl
from jax.experimental.pallas import tpu as pltpu

EPS = 1e-5
NEG_SLOPE = 0.01          # PyTorch nn.LeakyReLU default
IN_DIM = 28 * 28
H1, H2, OUT = 48, 12, 10


def _leaky_relu(h):
    return jnp.where(h >= 0, h, NEG_SLOPE * h)


# --------------------------------------------------------------------------
# Pass 1: h1_pre = x @ W1 + b1   (bf16 MXU, f32 accumulate)
#         outputs: h1_pre (bf16, HBM) + per-tile [sum; sumsq] for BN1 stats.
# --------------------------------------------------------------------------
def _pass1_kernel(x_ref, w1_ref, b1_ref, h1_ref, st_ref, *, batch, tile):
    i = pl.program_id(0)
    h = jnp.dot(x_ref[...], w1_ref[...], preferred_element_type=jnp.float32)
    h = h + b1_ref[...]                                    # f32 epilogue

    # Mask zero-padded batch rows out of the statistics (not out of h1 itself:
    # padded rows are discarded downstream).
    row = i * tile + jax.lax.broadcasted_iota(jnp.int32, (tile, 1), 0)
    hm = jnp.where(row < batch, h, 0.0)
    s = jnp.sum(hm, axis=0, keepdims=True)                 # (1, H1)
    ss = jnp.sum(hm * hm, axis=0, keepdims=True)           # (1, H1)
    st_ref[...] = jnp.concatenate([s, ss], axis=0).reshape(1, 2, H1)

    h1_ref[...] = h.astype(h1_ref.dtype)                   # bf16 intermediate


# --------------------------------------------------------------------------
# Pass 2: a = LeakyReLU(h1_pre * scale1 + shift1);  h2_pre = a @ W2 + b2
#         outputs: h2_pre (f32, tiny) + per-tile [sum; sumsq] for BN2 stats.
# --------------------------------------------------------------------------
def _pass2_kernel(h1_ref, sc1_ref, sh1_ref, w2_ref, b2_ref,
                  h2_ref, st_ref, *, batch, tile):
    i = pl.program_id(0)
    a = h1_ref[...].astype(jnp.float32) * sc1_ref[...] + sh1_ref[...]
    a = _leaky_relu(a)
    h = jnp.dot(a, w2_ref[...], preferred_element_type=jnp.float32) + b2_ref[...]

    row = i * tile + jax.lax.broadcasted_iota(jnp.int32, (tile, 1), 0)
    hm = jnp.where(row < batch, h, 0.0)
    s = jnp.sum(hm, axis=0, keepdims=True)                 # (1, H2)
    ss = jnp.sum(hm * hm, axis=0, keepdims=True)           # (1, H2)
    st_ref[...] = jnp.concatenate([s, ss], axis=0).reshape(1, 2, H2)

    h2_ref[...] = h


# --------------------------------------------------------------------------
# Pass 3: out = LeakyReLU(h2_pre * scale2 + shift2) @ W3 + b3
# --------------------------------------------------------------------------
def _pass3_kernel(h2_ref, sc2_ref, sh2_ref, w3_ref, b3_ref, out_ref):
    a = _leaky_relu(h2_ref[...] * sc2_ref[...] + sh2_ref[...])
    out = jnp.dot(a, w3_ref[...], preferred_element_type=jnp.float32) + b3_ref[...]
    out_ref[...] = out.astype(out_ref.dtype)


def _round_up(v, m):
    return (v + m - 1) // m * m


def _vmem_limit_bytes():
    """Generation-aware scoped-VMEM limit: ~70% of physical capacity."""
    cap = 64 * 1024 * 1024           # conservative fallback (v7x per-TC size)
    try:
        info = pltpu.get_tpu_info()
        cap = int(getattr(info, "vmem_capacity_bytes", cap)) or cap
    except Exception:
        pass
    return int(cap * 0.7)


def model_25_forward(x, params, *, batch_tile=2048):
    """x: (B, 1, 28, 28) or (B, 784) float32.  Returns (B, 10) float32."""
    B = x.shape[0]
    x2d = x.reshape(B, -1).astype(jnp.bfloat16)            # bf16 MXU operand

    (w1, b1, g1, be1, w2, b2, g2, be2, w3, b3) = params
    w1_bf = w1.astype(jnp.bfloat16)

    # (8,128)-legal batch tile; multiple of 16 for bf16 sublane packing.
    tb = min(_round_up(batch_tile, 16), _round_up(B, 16))
    b_pad = _round_up(B, tb)
    if b_pad != B:
        x2d = jnp.pad(x2d, ((0, b_pad - B), (0, 0)))
    nb = b_pad // tb

    row_map = lambda i: (i, 0)
    const = lambda i: (0, 0)
    st_map = lambda i: (i, 0, 0)
    # No cross-tile coupling inside any pass -> batch axis is parallel
    # (uses both TensorCores on v7x megacore).
    compiler_params = pltpu.CompilerParams(
        dimension_semantics=("parallel",),
        vmem_limit_bytes=_vmem_limit_bytes(),
    )

    # ------------------------- Pass 1 (dominant, HBM-bound on x) -----------
    cost1 = pl.CostEstimate(
        flops=2 * b_pad * IN_DIM * H1,
        transcendentals=0,
        bytes_accessed=(b_pad * IN_DIM * 2          # x (bf16)
                        + IN_DIM * H1 * 2           # w1 (bf16)
                        + b_pad * H1 * 2            # h1 (bf16)
                        + nb * 2 * H1 * 4),         # partial stats
    )
    h1, st1 = pl.pallas_call(
        functools.partial(_pass1_kernel, batch=B, tile=tb),
        grid=(nb,),
        in_specs=[
            pl.BlockSpec((tb, IN_DIM), row_map),    # x, streamed / pipelined
            pl.BlockSpec((IN_DIM, H1), const),      # w1 (bf16, resident idx)
            pl.BlockSpec((1, H1), const),           # b1
        ],
        out_specs=[
            pl.BlockSpec((tb, H1), row_map),        # pre-BN h1 -> HBM (bf16)
            pl.BlockSpec((1, 2, H1), st_map),       # per-tile [sum; sumsq]
        ],
        out_shape=[
            jax.ShapeDtypeStruct((b_pad, H1), jnp.bfloat16),
            jax.ShapeDtypeStruct((nb, 2, H1), jnp.float32),
        ],
        compiler_params=compiler_params,
        cost_estimate=cost1,
    )(x2d, w1_bf, b1)

    # BN1 stats: tiny (nb, 2, 48) reduction in JAX; fold into scale/shift.
    inv_n = 1.0 / float(B)
    mu1 = st1[:, 0, :].sum(axis=0, keepdims=True) * inv_n
    var1 = jnp.maximum(st1[:, 1, :].sum(axis=0, keepdims=True) * inv_n - mu1 * mu1, 0.0)
    scale1 = g1 * jax.lax.rsqrt(var1 + EPS)
    shift1 = be1 - mu1 * scale1

    # ------------------------- Pass 2 (tiny, streams h1) -------------------
    h2, st2 = pl.pallas_call(
        functools.partial(_pass2_kernel, batch=B, tile=tb),
        grid=(nb,),
        in_specs=[
            pl.BlockSpec((tb, H1), row_map),        # h1 (bf16, streamed)
            pl.BlockSpec((1, H1), const),           # scale1
            pl.BlockSpec((1, H1), const),           # shift1
            pl.BlockSpec((H1, H2), const),          # w2
            pl.BlockSpec((1, H2), const),           # b2
        ],
        out_specs=[
            pl.BlockSpec((tb, H2), row_map),        # pre-BN h2 (f32, 48 B/row)
            pl.BlockSpec((1, 2, H2), st_map),       # per-tile [sum; sumsq]
        ],
        out_shape=[
            jax.ShapeDtypeStruct((b_pad, H2), jnp.float32),
            jax.ShapeDtypeStruct((nb, 2, H2), jnp.float32),
        ],
        compiler_params=compiler_params,
    )(h1, scale1, shift1, w2, b2)

    mu2 = st2[:, 0, :].sum(axis=0, keepdims=True) * inv_n
    var2 = jnp.maximum(st2[:, 1, :].sum(axis=0, keepdims=True) * inv_n - mu2 * mu2, 0.0)
    scale2 = g2 * jax.lax.rsqrt(var2 + EPS)
    shift2 = be2 - mu2 * scale2

    # ------------------------- Pass 3 (tiny, streams h2, tiled output) -----
    out = pl.pallas_call(
        _pass3_kernel,
        grid=(nb,),
        in_specs=[
            pl.BlockSpec((tb, H2), row_map),        # h2 (f32, streamed)
            pl.BlockSpec((1, H2), const),           # scale2
            pl.BlockSpec((1, H2), const),           # shift2
            pl.BlockSpec((H2, OUT), const),         # w3
            pl.BlockSpec((1, OUT), const),          # b3
        ],
        out_specs=pl.BlockSpec((tb, OUT), row_map), # tiled (tb, 10) output
        out_shape=jax.ShapeDtypeStruct((b_pad, OUT), jnp.float32),
        compiler_params=compiler_params,
    )(h2, scale2, shift2, w3, b3)

    return out[:B]


def init_params(key):
    """Deterministic init mirroring nn.Linear / nn.BatchNorm1d shapes.

    Linear weights kept as (in, out) = transpose of PyTorch (out, in).
    Biases / BN params stored as (1, N) rows for 2-D broadcast in-kernel.
    """
    dims = [(IN_DIM, H1), (H1, H2), (H2, OUT)]
    keys = jax.random.split(key, 2 * len(dims))
    lin = []
    for i, (fin, fout) in enumerate(dims):
        bound = 1.0 / jnp.sqrt(fin)
        w = jax.random.uniform(keys[2 * i], (fin, fout), jnp.float32, -bound, bound)
        b = jax.random.uniform(keys[2 * i + 1], (1, fout), jnp.float32, -bound, bound)
        lin.append((w, b))
    (w1, b1), (w2, b2), (w3, b3) = lin
    g1, be1 = jnp.ones((1, H1), jnp.float32), jnp.zeros((1, H1), jnp.float32)
    g2, be2 = jnp.ones((1, H2), jnp.float32), jnp.zeros((1, H2), jnp.float32)
    return (w1, b1, g1, be1, w2, b2, g2, be2, w3, b3)


def _reference_forward(x, params):
    """Pure-JAX f32 reference (training-mode BatchNorm, biased variance)."""
    (w1, b1, g1, be1, w2, b2, g2, be2, w3, b3) = params
    h = x.reshape(x.shape[0], -1) @ w1 + b1
    h = (h - h.mean(0, keepdims=True)) / jnp.sqrt(h.var(0, keepdims=True) + EPS) * g1 + be1
    h = jnp.where(h >= 0, h, NEG_SLOPE * h)
    h = h @ w2 + b2
    h = (h - h.mean(0, keepdims=True)) / jnp.sqrt(h.var(0, keepdims=True) + EPS) * g2 + be2
    h = jnp.where(h >= 0, h, NEG_SLOPE * h)
    return h @ w3 + b3


if __name__ == "__main__":
    key = jax.random.PRNGKey(0)
    k_x, k_p = jax.random.split(key)

    # Small MNIST-like batch: (B, 1, 28, 28) NCHW, flattened in the forward.
    B = 8
    x = jax.random.normal(k_x, (B, 1, 28, 28), jnp.float32)
    params = init_params(k_p)

    fwd = jax.jit(model_25_forward)
    out = jax.block_until_ready(fwd(x, params))
    assert out.shape == (B, 10) and out.dtype == jnp.float32

    ref = _reference_forward(x, params)
    max_err = float(jnp.max(jnp.abs(out - ref)))
    assert max_err < 5e-2, f"mismatch vs reference: max abs err = {max_err}"

    print("KERNEL_OK")
</pallas_src>

<mosaic_0001>
module attributes {stable_mosaic.version = 11 : i64} {
  func.func @_pass1_kernel(%arg0: i32, %arg1: memref<16x784xbf16, #tpu.memory_space<vmem>>, %arg2: memref<784x48xbf16, #tpu.memory_space<vmem>>, %arg3: memref<1x48xf32, #tpu.memory_space<vmem>>, %arg4: memref<16x48xbf16, #tpu.memory_space<vmem>>, %arg5: memref<1x2x48xf32, #tpu.memory_space<vmem>>) attributes {dimension_semantics = [#tpu.dimension_semantics<parallel>], iteration_bounds = array<i64: 1>, scalar_prefetch = 0 : i64, scratch_operands = 0 : i64, tpu.core_type = #tpu.core_type<tc>, window_params = [{transform_indices = @transform_0, window_bounds = array<i64: 16, 784>}, {pipeline_mode = #tpu.pipeline_mode<synchronous>, transform_indices = @transform_1, window_bounds = array<i64: 784, 48>}, {pipeline_mode = #tpu.pipeline_mode<synchronous>, transform_indices = @transform_2, window_bounds = array<i64: 1, 48>}, {transform_indices = @transform_3, window_bounds = array<i64: 16, 48>}, {transform_indices = @transform_4, window_bounds = array<i64: 1, 2, 48>}]} {
    %c0 = arith.constant 0 : index
    %c0_0 = arith.constant 0 : index
    %0 = vector.load %arg1[%c0, %c0_0] : memref<16x784xbf16, #tpu.memory_space<vmem>>, vector<16x784xbf16>
    %c0_1 = arith.constant 0 : index
    %c0_2 = arith.constant 0 : index
    %1 = vector.load %arg2[%c0_1, %c0_2] : memref<784x48xbf16, #tpu.memory_space<vmem>>, vector<784x48xbf16>
    %cst = arith.constant dense<0.000000e+00> : vector<16x48xf32>
    %2 = tpu.matmul %0, %1, %cst {dimension_numbers = #tpu.dot_dimension_numbers<[1], [0], [0], [1], [0, 0, 1, 1], [], []>} : vector<16x784xbf16>, vector<784x48xbf16>, vector<16x48xf32> -> vector<16x48xf32>
    %c0_3 = arith.constant 0 : index
    %c0_4 = arith.constant 0 : index
    %3 = vector.load %arg3[%c0_3, %c0_4] : memref<1x48xf32, #tpu.memory_space<vmem>>, vector<1x48xf32>
    %4 = vector.broadcast %3 : vector<1x48xf32> to vector<16x48xf32>
    %5 = arith.addf %2, %4 : vector<16x48xf32>
    %c16_i32 = arith.constant 16 : i32
    %6 = arith.muli %arg0, %c16_i32 : i32
    %7 = tpu.iota {dimensions = array<i32: 0>} : vector<16x1xi32>
    %8 = vector.broadcast %6 : i32 to vector<16x1xi32>
    %9 = arith.addi %8, %7 : vector<16x1xi32>
    %c8_i32 = arith.constant 8 : i32
    %10 = vector.broadcast %c8_i32 : i32 to vector<16x1xi32>
    %11 = arith.cmpi slt, %9, %10 : vector<16x1xi32>
    %cst_5 = arith.constant 0.000000e+00 : f32
    %12 = vector.shape_cast %11 : vector<16x1xi1> to vector<16x1xi1>
    %13 = vector.broadcast %12 : vector<16x1xi1> to vector<16x48xi1>
    %14 = vector.broadcast %cst_5 : f32 to vector<16x48xf32>
    %15 = arith.select %13, %5, %14 : vector<16x48xi1>, vector<16x48xf32>
    %cst_6 = arith.constant dense<0.000000e+00> : vector<48xf32>
    %16 = vector.multi_reduction <add>, %15, %cst_6 [0] : vector<16x48xf32> to vector<48xf32>
    %17 = vector.shape_cast %16 : vector<48xf32> to vector<1x48xf32>
    %18 = arith.mulf %15, %15 : vector<16x48xf32>
    %cst_7 = arith.constant dense<0.000000e+00> : vector<48xf32>
    %19 = vector.multi_reduction <add>, %18, %cst_7 [0] : vector<16x48xf32> to vector<48xf32>
    %20 = vector.shape_cast %19 : vector<48xf32> to vector<1x48xf32>
    %21 = tpu.concatenate %17, %20 in 0 : vector<1x48xf32>, vector<1x48xf32> -> vector<2x48xf32>
    %22 = vector.shape_cast %21 : vector<2x48xf32> to vector<1x2x48xf32>
    %c0_8 = arith.constant 0 : index
    %c0_9 = arith.constant 0 : index
    %c0_10 = arith.constant 0 : index
    %23 = vector.load %arg5[%c0_8, %c0_9, %c0_10] : memref<1x2x48xf32, #tpu.memory_space<vmem>>, vector<1x2x48xf32>
    tpu.vector_store %arg5[%c0_8, %c0_9, %c0_10], %22 {strides = array<i32>} : memref<1x2x48xf32, #tpu.memory_space<vmem>>, vector<1x2x48xf32>,
    %24 = arith.truncf %5 : vector<16x48xf32> to vector<16x48xbf16>
    %c0_11 = arith.constant 0 : index
    %c0_12 = arith.constant 0 : index
    %25 = vector.load %arg4[%c0_11, %c0_12] : memref<16x48xbf16, #tpu.memory_space<vmem>>, vector<16x48xbf16>
    tpu.vector_store %arg4[%c0_11, %c0_12], %24 {strides = array<i32>} : memref<16x48xbf16, #tpu.memory_space<vmem>>, vector<16x48xbf16>,
    return
  }
  func.func @transform_0(%arg0: i32) -> (i32, i32) {
    %c0_i32 = arith.constant 0 : i32
    %c0_i32_0 = arith.constant 0 : i32
    return %arg0, %c0_i32 : i32, i32
  }
  func.func @transform_1(%arg0: i32) -> (i32, i32) {
    %c0_i32 = arith.constant 0 : i32
    %c0_i32_0 = arith.constant 0 : i32
    %c0_i32_1 = arith.constant 0 : i32
    return %c0_i32, %c0_i32_0 : i32, i32
  }
  func.func @transform_2(%arg0: i32) -> (i32, i32) {
    %c0_i32 = arith.constant 0 : i32
    %c0_i32_0 = arith.constant 0 : i32
    %c0_i32_1 = arith.constant 0 : i32
    return %c0_i32, %c0_i32_0 : i32, i32
  }
  func.func @transform_3(%arg0: i32) -> (i32, i32) {
    %c0_i32 = arith.constant 0 : i32
    %c0_i32_0 = arith.constant 0 : i32
    return %arg0, %c0_i32 : i32, i32
  }
  func.func @transform_4(%arg0: i32) -> (i32, i32, i32) {
    %c0_i32 = arith.constant 0 : i32
    %c0_i32_0 = arith.constant 0 : i32
    %c0_i32_1 = arith.constant 0 : i32
    return %arg0, %c0_i32, %c0_i32_0 : i32, i32, i32
  }
}

module attributes {stable_mosaic.version = 11 : i64} {
  func.func @_pass2_kernel(%arg0: i32, %arg1: memref<16x48xbf16, #tpu.memory_space<vmem>>, %arg2: memref<1x48xf32, #tpu.memory_space<vmem>>, %arg3: memref<1x48xf32, #tpu.memory_space<vmem>>, %arg4: memref<48x12xf32, #tpu.memory_space<vmem>>, %arg5: memref<1x12xf32, #tpu.memory_space<vmem>>, %arg6: memref<16x12xf32, #tpu.memory_space<vmem>>, %arg7: memref<1x2x12xf32, #tpu.memory_space<vmem>>) attributes {dimension_semantics = [#tpu.dimension_semantics<parallel>], iteration_bounds = array<i64: 1>, scalar_prefetch = 0 : i64, scratch_operands = 0 : i64, tpu.core_type = #tpu.core_type<tc>, window_params = [{transform_indices = @transform_0, window_bounds = array<i64: 16, 48>}, {pipeline_mode = #tpu.pipeline_mode<synchronous>, transform_indices = @transform_1, window_bounds = array<i64: 1, 48>}, {pipeline_mode = #tpu.pipeline_mode<synchronous>, transform_indices = @transform_2, window_bounds = array<i64: 1, 48>}, {pipeline_mode = #tpu.pipeline_mode<synchronous>, transform_indices = @transform_3, window_bounds = array<i64: 48, 12>}, {pipeline_mode = #tpu.pipeline_mode<synchronous>, transform_indices = @transform_4, window_bounds = array<i64: 1, 12>}, {transform_indices = @transform_5, window_bounds = array<i64: 16, 12>}, {transform_indices = @transform_6, window_bounds = array<i64: 1, 2, 12>}]} {
    %c0 = arith.constant 0 : index
    %c0_0 = arith.constant 0 : index
    %0 = vector.load %arg1[%c0, %c0_0] : memref<16x48xbf16, #tpu.memory_space<vmem>>, vector<16x48xbf16>
    %1 = arith.extf %0 : vector<16x48xbf16> to vector<16x48xf32>
    %c0_1 = arith.constant 0 : index
    %c0_2 = arith.constant 0 : index
    %2 = vector.load %arg2[%c0_1, %c0_2] : memref<1x48xf32, #tpu.memory_space<vmem>>, vector<1x48xf32>
    %3 = vector.broadcast %2 : vector<1x48xf32> to vector<16x48xf32>
    %4 = arith.mulf %1, %3 : vector<16x48xf32>
    %c0_3 = arith.constant 0 : index
    %c0_4 = arith.constant 0 : index
    %5 = vector.load %arg3[%c0_3, %c0_4] : memref<1x48xf32, #tpu.memory_space<vmem>>, vector<1x48xf32>
    %6 = vector.broadcast %5 : vector<1x48xf32> to vector<16x48xf32>
    %7 = arith.addf %4, %6 : vector<16x48xf32>
    %cst = arith.constant 0.000000e+00 : f32
    %8 = vector.broadcast %cst : f32 to vector<16x48xf32>
    %9 = arith.cmpf oge, %7, %8 : vector<16x48xf32>
    %cst_5 = arith.constant 0.00999999977 : f32
    %10 = vector.broadcast %cst_5 : f32 to vector<16x48xf32>
    %11 = arith.mulf %10, %7 : vector<16x48xf32>
    %12 = arith.select %9, %7, %11 : vector<16x48xi1>, vector<16x48xf32>
    %c0_6 = arith.constant 0 : index
    %c0_7 = arith.constant 0 : index
    %13 = vector.load %arg4[%c0_6, %c0_7] : memref<48x12xf32, #tpu.memory_space<vmem>>, vector<48x12xf32>
    %cst_8 = arith.constant dense<0.000000e+00> : vector<16x12xf32>
    %14 = tpu.matmul %12, %13, %cst_8 {dimension_numbers = #tpu.dot_dimension_numbers<[1], [0], [0], [1], [0, 0, 1, 1], [], []>} : vector<16x48xf32>, vector<48x12xf32>, vector<16x12xf32> -> vector<16x12xf32>
    %c0_9 = arith.constant 0 : index
    %c0_10 = arith.constant 0 : index
    %15 = vector.load %arg5[%c0_9, %c0_10] : memref<1x12xf32, #tpu.memory_space<vmem>>, vector<1x12xf32>
    %16 = vector.broadcast %15 : vector<1x12xf32> to vector<16x12xf32>
    %17 = arith.addf %14, %16 : vector<16x12xf32>
    %c16_i32 = arith.constant 16 : i32
    %18 = arith.muli %arg0, %c16_i32 : i32
    %19 = tpu.iota {dimensions = array<i32: 0>} : vector<16x1xi32>
    %20 = vector.broadcast %18 : i32 to vector<16x1xi32>
    %21 = arith.addi %20, %19 : vector<16x1xi32>
    %c8_i32 = arith.constant 8 : i32
    %22 = vector.broadcast %c8_i32 : i32 to vector<16x1xi32>
    %23 = arith.cmpi slt, %21, %22 : vector<16x1xi32>
    %cst_11 = arith.constant 0.000000e+00 : f32
    %24 = vector.shape_cast %23 : vector<16x1xi1> to vector<16x1xi1>
    %25 = vector.broadcast %24 : vector<16x1xi1> to vector<16x12xi1>
    %26 = vector.broadcast %cst_11 : f32 to vector<16x12xf32>
    %27 = arith.select %25, %17, %26 : vector<16x12xi1>, vector<16x12xf32>
    %cst_12 = arith.constant dense<0.000000e+00> : vector<12xf32>
    %28 = vector.multi_reduction <add>, %27, %cst_12 [0] : vector<16x12xf32> to vector<12xf32>
    %29 = vector.shape_cast %28 : vector<12xf32> to vector<1x12xf32>
    %30 = arith.mulf %27, %27 : vector<16x12xf32>
    %cst_13 = arith.constant dense<0.000000e+00> : vector<12xf32>
    %31 = vector.multi_reduction <add>, %30, %cst_13 [0] : vector<16x12xf32> to vector<12xf32>
    %32 = vector.shape_cast %31 : vector<12xf32> to vector<1x12xf32>
    %33 = tpu.concatenate %29, %32 in 0 : vector<1x12xf32>, vector<1x12xf32> -> vector<2x12xf32>
    %34 = vector.shape_cast %33 : vector<2x12xf32> to vector<1x2x12xf32>
    %c0_14 = arith.constant 0 : index
    %c0_15 = arith.constant 0 : index
    %c0_16 = arith.constant 0 : index
    %35 = vector.load %arg7[%c0_14, %c0_15, %c0_16] : memref<1x2x12xf32, #tpu.memory_space<vmem>>, vector<1x2x12xf32>
    tpu.vector_store %arg7[%c0_14, %c0_15, %c0_16], %34 {strides = array<i32>} : memref<1x2x12xf32, #tpu.memory_space<vmem>>, vector<1x2x12xf32>,
    %c0_17 = arith.constant 0 : index
    %c0_18 = arith.constant 0 : index
    %36 = vector.load %arg6[%c0_17, %c0_18] : memref<16x12xf32, #tpu.memory_space<vmem>>, vector<16x12xf32>
    tpu.vector_store %arg6[%c0_17, %c0_18], %17 {strides = array<i32>} : memref<16x12xf32, #tpu.memory_space<vmem>>, vector<16x12xf32>,
    return
  }
  func.func @transform_0(%arg0: i32) -> (i32, i32) {
    %c0_i32 = arith.constant 0 : i32
    %c0_i32_0 = arith.constant 0 : i32
    return %arg0, %c0_i32 : i32, i32
  }
  func.func @transform_1(%arg0: i32) -> (i32, i32) {
    %c0_i32 = arith.constant 0 : i32
    %c0_i32_0 = arith.constant 0 : i32
    %c0_i32_1 = arith.constant 0 : i32
    return %c0_i32, %c0_i32_0 : i32, i32
  }
  func.func @transform_2(%arg0: i32) -> (i32, i32) {
    %c0_i32 = arith.constant 0 : i32
    %c0_i32_0 = arith.constant 0 : i32
    %c0_i32_1 = arith.constant 0 : i32
    return %c0_i32, %c0_i32_0 : i32, i32
  }
  func.func @transform_3(%arg0: i32) -> (i32, i32) {
    %c0_i32 = arith.constant 0 : i32
    %c0_i32_0 = arith.constant 0 : i32
    %c0_i32_1 = arith.constant 0 : i32
    return %c0_i32, %c0_i32_0 : i32, i32
  }
  func.func @transform_4(%arg0: i32) -> (i32, i32) {
    %c0_i32 = arith.constant 0 : i32
    %c0_i32_0 = arith.constant 0 : i32
    %c0_i32_1 = arith.constant 0 : i32
    return %c0_i32, %c0_i32_0 : i32, i32
  }
  func.func @transform_5(%arg0: i32) -> (i32, i32) {
    %c0_i32 = arith.constant 0 : i32
    %c0_i32_0 = arith.constant 0 : i32
    return %arg0, %c0_i32 : i32, i32
  }
  func.func @transform_6(%arg0: i32) -> (i32, i32, i32) {
    %c0_i32 = arith.constant 0 : i32
    %c0_i32_0 = arith.constant 0 : i32
    %c0_i32_1 = arith.constant 0 : i32
    return %arg0, %c0_i32, %c0_i32_0 : i32, i32, i32
  }
}

module attributes {stable_mosaic.version = 11 : i64} {
  func.func @_pass3_kernel(%arg0: i32, %arg1: memref<16x12xf32, #tpu.memory_space<vmem>>, %arg2: memref<1x12xf32, #tpu.memory_space<vmem>>, %arg3: memref<1x12xf32, #tpu.memory_space<vmem>>, %arg4: memref<12x10xf32, #tpu.memory_space<vmem>>, %arg5: memref<1x10xf32, #tpu.memory_space<vmem>>, %arg6: memref<16x10xf32, #tpu.memory_space<vmem>>) attributes {dimension_semantics = [#tpu.dimension_semantics<parallel>], iteration_bounds = array<i64: 1>, scalar_prefetch = 0 : i64, scratch_operands = 0 : i64, tpu.core_type = #tpu.core_type<tc>, window_params = [{transform_indices = @transform_0, window_bounds = array<i64: 16, 12>}, {pipeline_mode = #tpu.pipeline_mode<synchronous>, transform_indices = @transform_1, window_bounds = array<i64: 1, 12>}, {pipeline_mode = #tpu.pipeline_mode<synchronous>, transform_indices = @transform_2, window_bounds = array<i64: 1, 12>}, {pipeline_mode = #tpu.pipeline_mode<synchronous>, transform_indices = @transform_3, window_bounds = array<i64: 12, 10>}, {pipeline_mode = #tpu.pipeline_mode<synchronous>, transform_indices = @transform_4, window_bounds = array<i64: 1, 10>}, {transform_indices = @transform_5, window_bounds = array<i64: 16, 10>}]} {
    %c0 = arith.constant 0 : index
    %c0_0 = arith.constant 0 : index
    %0 = vector.load %arg1[%c0, %c0_0] : memref<16x12xf32, #tpu.memory_space<vmem>>, vector<16x12xf32>
    %c0_1 = arith.constant 0 : index
    %c0_2 = arith.constant 0 : index
    %1 = vector.load %arg2[%c0_1, %c0_2] : memref<1x12xf32, #tpu.memory_space<vmem>>, vector<1x12xf32>
    %2 = vector.broadcast %1 : vector<1x12xf32> to vector<16x12xf32>
    %3 = arith.mulf %0, %2 : vector<16x12xf32>
    %c0_3 = arith.constant 0 : index
    %c0_4 = arith.constant 0 : index
    %4 = vector.load %arg3[%c0_3, %c0_4] : memref<1x12xf32, #tpu.memory_space<vmem>>, vector<1x12xf32>
    %5 = vector.broadcast %4 : vector<1x12xf32> to vector<16x12xf32>
    %6 = arith.addf %3, %5 : vector<16x12xf32>
    %cst = arith.constant 0.000000e+00 : f32
    %7 = vector.broadcast %cst : f32 to vector<16x12xf32>
    %8 = arith.cmpf oge, %6, %7 : vector<16x12xf32>
    %cst_5 = arith.constant 0.00999999977 : f32
    %9 = vector.broadcast %cst_5 : f32 to vector<16x12xf32>
    %10 = arith.mulf %9, %6 : vector<16x12xf32>
    %11 = arith.select %8, %6, %10 : vector<16x12xi1>, vector<16x12xf32>
    %c0_6 = arith.constant 0 : index
    %c0_7 = arith.constant 0 : index
    %12 = vector.load %arg4[%c0_6, %c0_7] : memref<12x10xf32, #tpu.memory_space<vmem>>, vector<12x10xf32>
    %cst_8 = arith.constant dense<0.000000e+00> : vector<16x10xf32>
    %13 = tpu.matmul %11, %12, %cst_8 {dimension_numbers = #tpu.dot_dimension_numbers<[1], [0], [0], [1], [0, 0, 1, 1], [], []>} : vector<16x12xf32>, vector<12x10xf32>, vector<16x10xf32> -> vector<16x10xf32>
    %c0_9 = arith.constant 0 : index
    %c0_10 = arith.constant 0 : index
    %14 = vector.load %arg5[%c0_9, %c0_10] : memref<1x10xf32, #tpu.memory_space<vmem>>, vector<1x10xf32>
    %15 = vector.broadcast %14 : vector<1x10xf32> to vector<16x10xf32>
    %16 = arith.addf %13, %15 : vector<16x10xf32>
    %c0_11 = arith.constant 0 : index
    %c0_12 = arith.constant 0 : index
    %17 = vector.load %arg6[%c0_11, %c0_12] : memref<16x10xf32, #tpu.memory_space<vmem>>, vector<16x10xf32>
    tpu.vector_store %arg6[%c0_11, %c0_12], %16 {strides = array<i32>} : memref<16x10xf32, #tpu.memory_space<vmem>>, vector<16x10xf32>,
    return
  }
  func.func @transform_0(%arg0: i32) -> (i32, i32) {
    %c0_i32 = arith.constant 0 : i32
    %c0_i32_0 = arith.constant 0 : i32
    return %arg0, %c0_i32 : i32, i32
  }
  func.func @transform_1(%arg0: i32) -> (i32, i32) {
    %c0_i32 = arith.constant 0 : i32
    %c0_i32_0 = arith.constant 0 : i32
    %c0_i32_1 = arith.constant 0 : i32
    return %c0_i32, %c0_i32_0 : i32, i32
  }
  func.func @transform_2(%arg0: i32) -> (i32, i32) {
    %c0_i32 = arith.constant 0 : i32
    %c0_i32_0 = arith.constant 0 : i32
    %c0_i32_1 = arith.constant 0 : i32
    return %c0_i32, %c0_i32_0 : i32, i32
  }
  func.func @transform_3(%arg0: i32) -> (i32, i32) {
    %c0_i32 = arith.constant 0 : i32
    %c0_i32_0 = arith.constant 0 : i32
    %c0_i32_1 = arith.constant 0 : i32
    return %c0_i32, %c0_i32_0 : i32, i32
  }
  func.func @transform_4(%arg0: i32) -> (i32, i32) {
    %c0_i32 = arith.constant 0 : i32
    %c0_i32_0 = arith.constant 0 : i32
    %c0_i32_1 = arith.constant 0 : i32
    return %c0_i32, %c0_i32_0 : i32, i32
  }
  func.func @transform_5(%arg0: i32) -> (i32, i32) {
    %c0_i32 = arith.constant 0 : i32
    %c0_i32_0 = arith.constant 0 : i32
    return %arg0, %c0_i32 : i32, i32
  }
}

</mosaic_0001>

<bundles_post_ra>
// kernel: model_25_forward.5
= control target key start
LH: loop header
LB: loop body
LE: loop exit
PB: predicated region body
PF: predicated region fallthrough
CT: control target
= control target key end

     0   :  { %vm62_vm0 = vcmask 1043456   ;;  %vm172_vm1 = vmmov 1   ;;  %vm55_vm3 = vcmask 97280   ;;  %vm141_vm6 = vcmask 80896   ;;  %s230_s3 = inlined_call_operand.vmem [shape: f32[12,10], index: 3, kind: input, shape index: {}]   ;;  %s231_s0 = inlined_call_operand.vmem [shape: f32[16,12], index: 0, kind: input, shape index: {}]   ;;  %s232_s1 = inlined_call_operand.vmem [shape: f32[1,12], index: 1, kind: input, shape index: {}]   ;;  %s233_s2 = inlined_call_operand.vmem [shape: f32[1,12], index: 2, kind: input, shape index: {}]   ;;  %s234_s4 = inlined_call_operand.vmem [shape: f32[1,10], index: 4, kind: input, shape index: {}]   ;;  %s235_s5 = inlined_call_operand.vmem [shape: f32[16,10], index: 5, kind: output, shape index: {}]  }
   0x1   :  { %v46_v0 = vld [vmem:[%s230_s3] sm:$0xff]  ;;  %v47_v1 = vld [vmem:[%s230_s3 + $0x8] sm:$0xf]  ;;  %vm166_vm2 = vmpackc.low %vm62_vm0, %vm172_vm1 }
   0x2   :  { %v165_v2 = vpack.c.bf16 %v47_v1, %v46_v0  ;;  %v20_v3 = vld [vmem:[%s231_s0] sm:$0xff]  ;;  %v21_v4 = vld [vmem:[%s231_s0 + $0x8] sm:$0xff] }
   0x3   :  { %v148_v5 = vld [vmem:[%s232_s1] ss:$0 sm:$0xff] }
   0x4   :  { %v29_v6 = vmul.f32 %v148_v5, %v20_v3  ;;  %v30_v7 = vmul.f32 %v148_v5, %v21_v4  ;;  %v149_v8 = vld [vmem:[%s233_s2] ss:$0 sm:$0xff]  ;;  %167 = vmatprep.subr.msk.bf16.mxu0 %vm166_vm2, %v165_v2 }
   0x5   :  { %170 = vmatpush3.bf16.msk.msra.mxu0 %vm166_vm2, %v165_v2  ;;  %v150_v15 = vld [vmem:[%s234_s4] ss:$0 sm:$0xff] }
   0x6   :  { %v38_v9 = vadd.f32 %v149_v8, %v29_v6  ;;  %v39_v10 = vadd.f32 %v149_v8, %v30_v7 }
   0x8   :  { %vm40_vm4 = vcmp.ge.f32.partialorder %v38_v9, 0.0  ;;  %v42_v11 = vmul.f32 0.01, %v38_v9  ;;  %vm41_vm5 = vcmp.ge.f32.partialorder %v39_v10, 0.0  ;;  %v43_v12 = vmul.f32 0.01, %v39_v10 }
   0xa   :  { %v44_v13 = vsel %vm40_vm4, %v38_v9, %v42_v11  ;;  %v45_v14 = vsel %vm41_vm5, %v39_v10, %v43_v12 }
   0xb   :  { %162 = vmatprep.mubr.msk.f32.mxu0 %vm55_vm3, %v44_v13 }
   0xc   :  { %163 = vmatmul.mubr.msk.f32.vlgmr.msra.gmra.mrb[0].mxu0 %vm55_vm3, %v45_v14 }
  0xdf   :  { %v164_v16 = vpop.f32.mrb[0].mxu0 }
  0xe0   :  { %v138_v17 = vadd.f32 %v164_v16, %v150_v15  ;;  %v132_v18 = vpop.f32.mrb[1].mxu0 }
  0xe1   :  { %v133_v19 = vadd.f32 %v150_v15, %v132_v18 }
  0xe2   :  { %143 = vst.msk [vmem:[%s235_s5 + $0x8] sm:$0xff] %vm141_vm6, %v138_v17 }
  0xe3   :  { %142 = vst.msk [vmem:[%s235_s5] sm:$0xff] %vm141_vm6, %v133_v19 }

// kernel: model_25_forward.4
= control target key start
LH: loop header
LB: loop body
LE: loop exit
PB: predicated region body
PF: predicated region fallthrough
CT: control target
= control target key end

     0   :  { %vm63_vm0 = vcmask 392192   ;;  %vm160_vm3 = vcmask 97280   ;;  %vm181_vm4 = vcmask 1040384   ;;  %vm183_vm5 = vcmask 91136   ;;  %s313_s3 = inlined_call_operand.vmem [shape: f32[48,12], index: 3, kind: input, shape index: {}]   ;;  %s314_s0 = inlined_call_operand.vmem [shape: bf16[16,48], index: 0, kind: input, shape index: {}]   ;;  %s315_s1 = inlined_call_operand.vmem [shape: f32[1,48], index: 1, kind: input, shape index: {}]   ;;  %s316_s2 = inlined_call_operand.vmem [shape: f32[1,48], index: 2, kind: input, shape index: {}]   ;;  %s317_s4 = inlined_call_operand.vmem [shape: f32[1,12], index: 4, kind: input, shape index: {}]   ;;  %s318_s5 = inlined_call_operand.vmem [shape: f32[16,12], index: 5, kind: output, shape index: {0}]   ;;  %s319_s6 = inlined_call_operand.vmem [shape: f32[1,2,12], index: 6, kind: output, shape index: {1}]  }
   0x1   :  { %v50_v0 = vld [vmem:[%s313_s3] sm:$0xff]  ;;  %v51_v1 = vld [vmem:[%s313_s3 + $0x8] sm:$0xff]  ;;  %v52_v2 = vld [vmem:[%s313_s3 + $0x10] sm:$0xff] }
   0x2   :  { %v227_v3 = vpack.c.bf16 %v51_v1, %v50_v0  ;;  %v53_v4 = vld [vmem:[%s313_s3 + $0x18] sm:$0xff]  ;;  %v54_v5 = vld [vmem:[%s313_s3 + $0x20] sm:$0xff]  ;;  %v55_v7 = vld [vmem:[%s313_s3 + $0x28] sm:$0xff] }
   0x3   :  { %v231_v6 = vpack.c.bf16 %v53_v4, %v52_v2  ;;  %v201_v8 = vld [vmem:[%s314_s0] sm:$0xff]   ;;  %v235_v13 = vpack.c.bf16 %v55_v7, %v54_v5 }
   0x4   :  { %v195_v9 = vld [vmem:[%s315_s1] ss:$0 sm:$0xff]  ;;  %228 = vmatprep.subr.bf16.mxu0 %v227_v3  ;;  %v202_v10 = vunpack.c.l.bf16 %v201_v8  ;;  %v203_v11 = vunpack.c.h.bf16 %v201_v8 }
   0x5   :  { %230 = vmatpush3.bf16.msra.mxu0 %v227_v3  ;;  %v196_v12 = vld [vmem:[%s316_s2] ss:$0 sm:$0xff] }
   0x6   :  { %232 = vmatprep.subr.bf16.mxu0 %v231_v6  ;;  %v33_v14 = vmul.f32 %v202_v10, %v195_v9  ;;  %v34_v15 = vmul.f32 %v203_v11, %v195_v9  ;;  %v197_v22 = vld [vmem:[%s317_s4] ss:$0 sm:$0xff] }
   0x8   :  { %v42_v16 = vadd.f32 %v196_v12, %v33_v14  ;;  %v43_v17 = vadd.f32 %v196_v12, %v34_v15 }
   0x9   :  { %234 = vmatpush3.bf16.msra.mxu0 %v231_v6 }
   0xa   :  { %236 = vmatprep.subr.bf16.mxu0 %v235_v13  ;;  %vm44_vm1 = vcmp.ge.f32.partialorder %v42_v16, 0.0  ;;  %v46_v18 = vmul.f32 0.01, %v42_v16  ;;  %vm45_vm2 = vcmp.ge.f32.partialorder %v43_v17, 0.0  ;;  %v47_v19 = vmul.f32 0.01, %v43_v17 }
   0xc   :  { %v48_v20 = vsel %vm44_vm1, %v42_v16, %v46_v18  ;;  %v49_v21 = vsel %vm45_vm2, %v43_v17, %v47_v19 }
   0xd   :  { %238 = vmatpush3.bf16.msra.mxu0 %v235_v13  ;;  %224 = vmatprep.mubr.msk.f32.mxu0 %vm63_vm0, %v48_v20 }
  0x10   :  { %225 = vmatmul.mubr.msk.f32.vlgmr.msra.gmra.mrb[0].mxu0 %vm63_vm0, %v49_v21 }
  0xe3   :  { %v226_v23 = vpop.f32.mrb[0].mxu0 }
  0xe4   :  { %v142_v24 = vadd.f32 %v226_v23, %v197_v22  ;;  %v136_v25 = vpop.f32.mrb[1].mxu0 }
  0xe5   :  { %v137_v26 = vadd.f32 %v197_v22, %v136_v25 }
  0xe6   :  { %186 = vst.msk [vmem:[%s318_s5 + $0x8] sm:$0xff] %vm160_vm3, %v142_v24 }
  0xe7   :  { %v161_v27 = vsel %vm160_vm3, %v137_v26, 0.0  ;;  %v170_v28 = vmul.f32 %v137_v26, %v137_v26  ;;  %185 = vst.msk [vmem:[%s318_s5] sm:$0xff] %vm160_vm3, %v137_v26 }
  0xe8   :  { %v164_v29 = vrot.slane %v161_v27, 4 }
  0xe9   :  { %v172_v30 = vsel %vm160_vm3, %v170_v28, 0.0 }
  0xea   :  { %v165_v31 = vadd.f32 %v164_v29, %v161_v27  ;;  %v175_v32 = vrot.slane %v172_v30, 4 }
  0xec   :  { %v166_v33 = vrot.slane %v165_v31, 2  ;;  %v176_v34 = vadd.f32 %v175_v32, %v172_v30 }
  0xee   :  { %v167_v35 = vadd.f32 %v166_v33, %v165_v31  ;;  %v177_v36 = vrot.slane %v176_v34, 2 }
  0xf0   :  { %v168_v37 = vrot.slane %v167_v35, 1  ;;  %v178_v38 = vadd.f32 %v177_v36, %v176_v34 }
  0xf2   :  { %v179_v39 = vrot.slane %v178_v38, 1  ;;  %v169_v40 = vadd.f32 %v168_v37, %v167_v35 }
  0xf4   :  { %v180_v41 = vadd.f32 %v179_v39, %v178_v38 }
  0xf6   :  { %v182_v42 = vsel %vm181_vm4, %v169_v40, %v180_v41 }
  0xf7   :  { %184 = vst.msk [vmem:[%s319_s6] sm:$0x3] %vm183_vm5, %v182_v42 }

// kernel: model_25_forward.3
= control target key start
LH: loop header
LB: loop body
LE: loop exit
PB: predicated region body
PF: predicated region fallthrough
CT: control target
= control target key end

     0   :  { %v883_v38 = vmov 0.0   ;;  %vm884_vm0 = vmmov 0   ;;  %vm459_vm1 = vcmask 130048   ;;  %vm642_vm2 = vcmask 392192   ;;  %s1090_s1 = inlined_call_operand.vmem [shape: bf16[784,48], index: 1, kind: input, shape index: {}]   ;;  %s1091_s0 = inlined_call_operand.vmem [shape: bf16[16,784], index: 0, kind: input, shape index: {}]   ;;  %s1092_s2 = inlined_call_operand.vmem [shape: f32[1,48], index: 2, kind: input, shape index: {}]   ;;  %s1093_s3 = inlined_call_operand.vmem [shape: bf16[16,48], index: 3, kind: output, shape index: {0}]   ;;  %s1094_s4 = inlined_call_operand.vmem [shape: f32[1,2,48], index: 4, kind: output, shape index: {1}]  }
   0x1   :  { %v824_v0 = vld [vmem:[%s1090_s1 + $0x40] sm:$0xff]   ;;  %v828_v4 = vld [vmem:[%s1090_s1 + $0x48] sm:$0xff]   ;;  %v832_v8 = vld [vmem:[%s1090_s1 + $0x50] sm:$0xff]   ;;  %vm675_vm3 = vcmask 388096   ;;  %vm663_vm4 = vcmask 1040384   ;;  %vm665_vm5 = vcmask 386048  }
   0x2   :  { %v825_v1 = vld [vmem:[%s1090_s1] sm:$0xff]   ;;  %748 = vmatprep.subr.bf16.mxu0 %v824_v0  ;;  %v829_v5 = vld [vmem:[%s1090_s1 + $0x8] sm:$0xff]   ;;  %v833_v9 = vld [vmem:[%s1090_s1 + $0x10] sm:$0xff]  }
   0x3   :  { %v826_v2 = vld [vmem:[%s1090_s1 + $0xc0] sm:$0xff]   ;;  %749 = vmatpush3.bf16.msra.mxu0 %v825_v1  ;;  %v830_v6 = vld [vmem:[%s1090_s1 + $0xc8] sm:$0xff]   ;;  %v834_v10 = vld [vmem:[%s1090_s1 + $0xd0] sm:$0xff]  }
   0x4   :  { %v827_v3 = vld [vmem:[%s1090_s1 + $0x80] sm:$0xff]   ;;  %770 = vmatprep.subr.bf16.mxu1 %v826_v2  ;;  %750 = vmatprep.subr.bf16.mxu0 %v828_v4  ;;  %v831_v7 = vld [vmem:[%s1090_s1 + $0x88] sm:$0xff]   ;;  %v835_v11 = vld [vmem:[%s1090_s1 + $0x90] sm:$0xff]  }
   0x5   :  { %771 = vmatpush3.bf16.msra.mxu1 %v827_v3  ;;  %v836_v12 = vld [vmem:[%s1090_s1 + $0x58] sm:$0xff]   ;;  %v840_v16 = vld [vmem:[%s1090_s1 + $0x60] sm:$0xff]   ;;  %v844_v20 = vld [vmem:[%s1090_s1 + $0x68] sm:$0xff]  }
   0x6   :  { %772 = vmatprep.subr.bf16.mxu1 %v830_v6  ;;  %v837_v13 = vld [vmem:[%s1090_s1 + $0x18] sm:$0xff]   ;;  %v841_v17 = vld [vmem:[%s1090_s1 + $0x20] sm:$0xff]   ;;  %v845_v21 = vld [vmem:[%s1090_s1 + $0x28] sm:$0xff]  }
   0x7   :  { %751 = vmatpush3.bf16.msra.mxu0 %v829_v5  ;;  %v838_v14 = vld [vmem:[%s1090_s1 + $0xd8] sm:$0xff]   ;;  %v842_v18 = vld [vmem:[%s1090_s1 + $0xe0] sm:$0xff]   ;;  %v846_v22 = vld [vmem:[%s1090_s1 + $0xe8] sm:$0xff]  }
   0x8   :  { %752 = vmatprep.subr.bf16.mxu0 %v832_v8  ;;  %v839_v15 = vld [vmem:[%s1090_s1 + $0x98] sm:$0xff]   ;;  %v843_v19 = vld [vmem:[%s1090_s1 + $0xa0] sm:$0xff]   ;;  %v847_v23 = vld [vmem:[%s1090_s1 + $0xa8] sm:$0xff]  }
   0x9   :  { %773 = vmatpush3.bf16.msra.mxu1 %v831_v7  ;;  %v848_v24 = vld [vmem:[%s1090_s1 + $0x70] sm:$0xff]   ;;  %v852_v28 = vld [vmem:[%s1090_s1 + $0x78] sm:$0xff]   ;;  %v857_v32 = vld [vmem:[%s1091_s0 + $0x4] ss:$28 sps:$4 sm:$0xff]  }
   0xa   :  { %774 = vmatprep.subr.bf16.mxu1 %v834_v10  ;;  %v849_v25 = vld [vmem:[%s1090_s1 + $0x30] sm:$0xff]   ;;  %v853_v29 = vld [vmem:[%s1090_s1 + $0x38] sm:$0xff]   ;;  %495 = vmatprep.mubr.bf16.mxu0 %v857_v32  ;;  %v859_v34 = vld [vmem:[%s1090_s1 + $0x140] sm:$0xff]  }
   0xb   :  { %753 = vmatpush3.bf16.msra.mxu0 %v833_v9  ;;  %v850_v26 = vld [vmem:[%s1090_s1 + $0xf0] sm:$0xff]   ;;  %v854_v30 = vld [vmem:[%s1090_s1 + $0xf8] sm:$0xff]   ;;  %v860_v35 = vld [vmem:[%s1091_s0 + $0x8] ss:$28 sps:$4 sm:$0xff]  }
   0xc   :  { %754 = vmatprep.subr.bf16.mxu0 %v836_v12  ;;  %v851_v27 = vld [vmem:[%s1090_s1 + $0xb0] sm:$0xff]   ;;  %v855_v31 = vld [vmem:[%s1091_s0] ss:$28 sps:$4 sm:$0xff]   ;;  %v862_v36 = vld [vmem:[%s1091_s0 + $0xc] ss:$28 sps:$4 sm:$0xff]  }
   0xd   :  { %775 = vmatpush3.bf16.msra.mxu1 %v835_v11  ;;  %v858_v33 = vld [vmem:[%s1090_s1 + $0xb8] sm:$0xff]   ;;  %v863_v37 = vld [vmem:[%s1090_s1 + $0x100] sm:$0xff]   ;;  %536 = vmatprep.mubr.bf16.mxu1 %v862_v36  ;;  %v864_v39 = vld [vmem:[%s1090_s1 + $0x148] sm:$0xff]  }
   0xe   :  { %776 = vmatprep.subr.bf16.mxu1 %v838_v14  ;;  %v865_v40 = vld [vmem:[%s1090_s1 + $0x108] sm:$0xff]   ;;  %v866_v41 = vld [vmem:[%s1090_s1 + $0x150] sm:$0xff]   ;;  %v868_v43 = vld [vmem:[%s1090_s1 + $0x158] sm:$0xff]  }
   0xf   :  { %755 = vmatpush3.bf16.msra.mxu0 %v837_v13  ;;  %v867_v42 = vld [vmem:[%s1090_s1 + $0x110] sm:$0xff]   ;;  %v869_v44 = vld [vmem:[%s1090_s1 + $0x118] sm:$0xff]   ;;  %v870_v45 = vld [vmem:[%s1090_s1 + $0x160] sm:$0xff]  }
  0x10   :  { %756 = vmatprep.subr.bf16.mxu0 %v840_v16  ;;  %v871_v46 = vld [vmem:[%s1090_s1 + $0x120] sm:$0xff]   ;;  %v872_v47 = vld [vmem:[%s1090_s1 + $0x168] sm:$0xff]   ;;  %v881_v49 = vld [vmem:[%s1091_s0 + $0x14] ss:$28 sps:$4 sm:$0xff]  }
  0x11   :  { %777 = vmatpush3.bf16.msra.mxu1 %v839_v15  ;;  %v878_v48 = vld [vmem:[%s1090_s1 + $0x180] sm:$0xff]   ;;  %v882_v50 = vld [vmem:[%s1091_s0 + $0x18] ss:$28 sps:$4 sm:$0xff]   ;;  %v873_v51 = vld [vmem:[%s1090_s1 + $0x128] sm:$0xff]  }
  0x12   :  { %778 = vmatprep.subr.bf16.mxu1 %v842_v18  ;;  %v874_v52 = vld [vmem:[%s1090_s1 + $0x170] sm:$0xff]   ;;  %v876_v54 = vld [vmem:[%s1090_s1 + $0x178] sm:$0xff]   ;;  %v686_v58 = vld [vmem:[%s1092_s2] ss:$0 sm:$0xff] }
  0x13   :  { %757 = vmatpush3.bf16.msra.mxu0 %v841_v17  ;;  %v875_v53 = vld [vmem:[%s1090_s1 + $0x130] sm:$0xff]   ;;  %v877_v55 = vld [vmem:[%s1090_s1 + $0x138] sm:$0xff]  }
  0x14   :  { %758 = vmatprep.subr.bf16.mxu0 %v844_v20  ;;  %v879_v56 = vld [vmem:[%s1091_s0 + $0x10] ss:$28 sps:$4 sm:$0xff]  }
  0x15   :  { %779 = vmatpush3.bf16.msra.mxu1 %v843_v19 }
  0x16   :  { %780 = vmatprep.subr.bf16.mxu1 %v846_v22 }
  0x17   :  { %759 = vmatpush3.bf16.msra.mxu0 %v845_v21 }
  0x18   :  { %760 = vmatprep.subr.bf16.mxu0 %v848_v24 }
  0x19   :  { %781 = vmatpush3.bf16.msra.mxu1 %v847_v23 }
  0x1a   :  { %782 = vmatprep.subr.bf16.mxu1 %v850_v26 }
  0x1b   :  { %761 = vmatpush3.bf16.msra.mxu0 %v849_v25 }
  0x1c   :  { %762 = vmatprep.subr.bf16.mxu0 %v852_v28 }
  0x1d   :  { %783 = vmatpush3.bf16.msra.mxu1 %v851_v27 }
  0x1e   :  { %784 = vmatprep.subr.bf16.mxu1 %v854_v30 }
  0x1f   :  { %763 = vmatpush3.bf16.msra.mxu0 %v853_v29 }
  0x20   :  { %792 = vmatprep.subr.bf16.mxu0 %v859_v34 }
  0x21   :  { %785 = vmatpush3.bf16.msra.mxu1 %v858_v33 }
  0x22   :  { %496 = vmatmul.mubr.bf16.vlgmr.msra.gmra.mrb[0].mxu0 %v855_v31  ;;  %816 = vmatprep.subr.bf16.mxu1 %v883_v38 }
  0x23   :  { %793 = vmatpush3.bf16.msra.mxu0 %v863_v37  ;;  %577 = vmatprep.mubr.bf16.mxu0 %v881_v49 }
  0x24   :  { %537 = vmatmul.mubr.bf16.vlgmr.msra.gmra.mrb[0].mxu1 %v860_v35  ;;  %794 = vmatprep.subr.bf16.mxu0 %v864_v39 }
  0x25   :  { %818 = vmatprep.mubr.msk.bf16.mxu1 %vm884_vm0, %v883_v38  ;;  %817 = vmatpush3.bf16.msra.mxu1 %v878_v48 }
  0x27   :  { %795 = vmatpush3.bf16.msra.mxu0 %v865_v40 }
  0x28   :  { %796 = vmatprep.subr.bf16.mxu0 %v866_v41 }
  0x2b   :  { %797 = vmatpush3.bf16.msra.mxu0 %v867_v42 }
  0x2c   :  { %798 = vmatprep.subr.bf16.mxu0 %v868_v43  ;;  %819 = vmatmul.mubr.msk.bf16.vlgmr.msra.gmra.mrb[4].mxu1 %vm459_vm1, %v882_v50 }
  0x2f   :  { %799 = vmatpush3.bf16.msra.mxu0 %v869_v44 }
  0x30   :  { %800 = vmatprep.subr.bf16.mxu0 %v870_v45 }
  0x33   :  { %801 = vmatpush3.bf16.msra.mxu0 %v871_v46 }
  0x34   :  { %802 = vmatprep.subr.bf16.mxu0 %v872_v47 }
  0x37   :  { %803 = vmatpush3.bf16.msra.mxu0 %v873_v51 }
  0x38   :  { %804 = vmatprep.subr.bf16.mxu0 %v874_v52 }
  0x3b   :  { %805 = vmatpush3.bf16.msra.mxu0 %v875_v53 }
  0x3c   :  { %806 = vmatprep.subr.bf16.mxu0 %v876_v54 }
  0x3f   :  { %807 = vmatpush3.bf16.msra.mxu0 %v877_v55 }
  0x42   :  { %578 = vmatmul.mubr.bf16.vlgmr.msra.gmra.mrb[4].mxu0 %v879_v56 }
  0xf5   :  { %v764_v57 = vpop.f32.mrb[0].mxu0 }
  0xf6   :  { %v765_v59 = vpop.f32.mrb[1].mxu0 }
  0xf7   :  { %v766_v60 = vadd.f32 %v765_v59, %v764_v57  ;;  %v767_v61 = vpop.f32.mrb[2].mxu0  ;;  %v786_v62 = vpop.f32.mrb[0].mxu1 }
  0xf8   :  { %v768_v63 = vpop.f32.mrb[3].mxu0  ;;  %v787_v2 = vpop.f32.mrb[1].mxu1 }
  0xf9   :  { %v498_v0 = vadd.f32 %v766_v60, %v686_v58  ;;  %v769_v1 = vadd.f32 %v768_v63, %v767_v61  ;;  %v788_v3 = vadd.f32 %v787_v2, %v786_v62  ;;  %v789_v4 = vpop.f32.mrb[2].mxu1 }
  0xfa   :  { %v790_v6 = vpop.f32.mrb[3].mxu1 }
  0xfb   :  { %v501_v5 = vadd.f32 %v769_v1, %v686_v58  ;;  %v539_v7 = vadd.f32 %v788_v3, %v498_v0  ;;  %v791_v8 = vadd.f32 %v790_v6, %v789_v4 }
  0xfd   :  { %v542_v9 = vadd.f32 %v791_v8, %v501_v5 }
  0xff   :  { %v620_v10 = vpop.f32.mrb[4].mxu1 }
 0x100   :  { %v820_v11 = vpop.f32.mrb[5].mxu1 }
 0x101   :  { %v623_v12 = vpop.f32.mrb[6].mxu1 }
 0x102   :  { %v821_v13 = vpop.f32.mrb[7].mxu1 }
 0x115   :  { %v808_v14 = vpop.f32.mrb[4].mxu0 }
 0x116   :  { %v809_v15 = vpop.f32.mrb[5].mxu0 }
 0x117   :  { %v810_v16 = vadd.f32 %v809_v15, %v808_v14  ;;  %v811_v17 = vpop.f32.mrb[6].mxu0 }
 0x118   :  { %v812_v18 = vpop.f32.mrb[7].mxu0 }
 0x119   :  { %v580_v19 = vadd.f32 %v810_v16, %v539_v7  ;;  %v813_v20 = vadd.f32 %v812_v18, %v811_v17 }
 0x11b   :  { %v621_v21 = vadd.f32 %v620_v10, %v580_v19  ;;  %v583_v22 = vadd.f32 %v813_v20, %v542_v9 }
 0x11d   :  { %v643_v23 = vsel %vm642_vm2, %v621_v21, 0.0  ;;  %v652_v24 = vmul.f32 %v621_v21, %v621_v21  ;;  %v746_v25 = vpack.c.bf16 %v621_v21, %v621_v21  ;;  %v624_v26 = vadd.f32 %v623_v12, %v583_v22 }
 0x11e   :  { %v646_v27 = vrot.slane %v643_v23, 4 }
 0x11f   :  { %v654_v28 = vsel %vm642_vm2, %v652_v24, 0.0  ;;  %v747_v29 = vpack.c.bf16 %v624_v26, %v624_v26  ;;  %676 = vst.msk [vmem:[%s1093_s3] sm:$0xf] %vm675_vm3, %v746_v25 }
 0x120   :  { %v647_v30 = vadd.f32 %v646_v27, %v643_v23  ;;  %v657_v31 = vrot.slane %v654_v28, 4 }
 0x121   :  { %677 = vst.msk [vmem:[%s1093_s3 + $0x4] sm:$0xf] %vm675_vm3, %v747_v29 }
 0x122   :  { %v648_v32 = vrot.slane %v647_v30, 2  ;;  %v658_v33 = vadd.f32 %v657_v31, %v654_v28 }
 0x124   :  { %v649_v34 = vadd.f32 %v648_v32, %v647_v30  ;;  %v659_v35 = vrot.slane %v658_v33, 2 }
 0x126   :  { %v650_v36 = vrot.slane %v649_v34, 1  ;;  %v660_v37 = vadd.f32 %v659_v35, %v658_v33 }
 0x128   :  { %v661_v38 = vrot.slane %v660_v37, 1  ;;  %v651_v39 = vadd.f32 %v650_v36, %v649_v34 }
 0x12a   :  { %v662_v40 = vadd.f32 %v661_v38, %v660_v37 }
 0x12c   :  { %v664_v41 = vsel %vm663_vm4, %v651_v39, %v662_v40 }
 0x12d   :  { %666 = vst.msk [vmem:[%s1094_s4] sm:$0x3] %vm665_vm5, %v664_v41 }

</bundles_post_ra>
